<compile_context>
chip_gen: v5e
topology: v5e:2x2
jax: 0.10.0
libtpu: 0.0.40
codegen_flags: <defaults>
</compile_context>

<pallas_src>
import functools

import jax
import jax.numpy as jnp
from jax import lax
from jax.experimental import pallas as pl
from jax.experimental.pallas import tpu as pltpu


# --------------------------------------------------------------------------- #
# Weight prep: fold the dw taps + 'same' W-padding of a 3x3 conv into per-dh
# block-Toeplitz row operators:  out_row = sum_dh in_row[dh] @ T[dh]
#   in_row  : (W*Cin,)  flattened input row  (w-major, then channel)
#   out_row : (W*Cout,) flattened output row
# --------------------------------------------------------------------------- #
def toeplitz_conv_weights(w_hwio, W):
    KH, KW, Cin, Cout = w_hwio.shape
    T = jnp.zeros((KH, W * Cin, W * Cout), w_hwio.dtype)
    half = KW // 2
    for w in range(W):
        for dw in range(KW):
            wi = w + dw - half
            if 0 <= wi < W:
                T = T.at[:, wi * Cin:(wi + 1) * Cin,
                         w * Cout:(w + 1) * Cout].set(w_hwio[:, dw])
    return T                                          # (KH, W*Cin, W*Cout)


# ------------------------------- Pallas kernel ------------------------------ #
def _fused_upblock_kernel(cat_hbm, t1_ref, t2_ref, b1_ref, b2_ref, o_ref,
                          cbuf, sem, *, H, TH, neg_slope):
    # cat_hbm : (N, H+4, W*(Ce+Cx))  HBM, 2 zero halo rows top & bottom,
    #           lanes = [enc rows flat | upsampled rows flat]
    # t1_ref  : (3, W*(Ce+Cx), W*C2) VMEM  conv1 row-operators (concat folded)
    # t2_ref  : (3, W*C2,      W*C2) VMEM  conv2 row-operators
    # b1_ref/b2_ref : (1, W*C2)            biases tiled across W (lane-dense)
    # o_ref   : (1, TH, W*C2)              output row tile
    # cbuf    : VMEM scratch (TH+4, W*(Ce+Cx)) input row window (with halo)
    n = pl.program_id(0)
    r = pl.program_id(1)
    row0 = pl.multiple_of(r * TH, TH)

    # Manual DMA: overlapping halo row windows are not expressible with a
    # plain Blocked BlockSpec.
    cp = pltpu.make_async_copy(cat_hbm.at[n, pl.ds(row0, TH + 4), :],
                               cbuf, sem.at[0])
    cp.start()
    cp.wait()

    wc2 = o_ref.shape[-1]
    c = cbuf[...]                                     # (TH+4, W*(Ce+Cx))

    # ---- conv1 + LeakyReLU over TH+2 rows (1-row halo for conv2) ----------- #
    # bias folded into the accumulator init (no zeros + extra add)
    acc1 = jnp.broadcast_to(b1_ref[...], (TH + 2, wc2)).astype(jnp.float32)
    for dh in range(3):
        acc1 = acc1 + jnp.dot(c[dh:dh + TH + 2], t1_ref[dh],
                              preferred_element_type=jnp.float32)
    h1 = jnp.where(acc1 >= 0, acc1, neg_slope * acc1)

    # conv2's zero 'same' padding in H: conv1 halo rows outside the image
    # must be 0, not LReLU(conv1(zero rows)).
    g = r * TH - 1 + lax.broadcasted_iota(jnp.int32, (TH + 2, 1), 0)
    h1 = jnp.where((g >= 0) & (g < H), h1, 0.0)

    # ---- conv2 + LeakyReLU, TH output rows --------------------------------- #
    acc2 = jnp.broadcast_to(b2_ref[...], (TH, wc2)).astype(jnp.float32)
    for dh in range(3):
        acc2 = acc2 + jnp.dot(h1[dh:dh + TH], t2_ref[dh],
                              preferred_element_type=jnp.float32)
    out = jnp.where(acc2 >= 0, acc2, neg_slope * acc2)
    o_ref[0] = out.astype(o_ref.dtype)                # lane-dense 128-wide store


# ------------------------------ JAX glue ----------------------------------- #
def bilinear_upsample_align_corners(x_nhwc, scale):
    """F.interpolate(mode='bilinear', align_corners=True) on NHWC."""
    N, H, W, C = x_nhwc.shape
    Ho, Wo = H * scale, W * scale

    def src(size_in, size_out):
        if size_out == 1 or size_in == 1:
            return jnp.zeros((size_out,), jnp.float32)
        return jnp.arange(size_out, dtype=jnp.float32) * (
            (size_in - 1) / (size_out - 1))

    hs, ws = src(H, Ho), src(W, Wo)
    h0 = jnp.floor(hs).astype(jnp.int32)
    w0 = jnp.floor(ws).astype(jnp.int32)
    h1 = jnp.minimum(h0 + 1, H - 1)
    w1 = jnp.minimum(w0 + 1, W - 1)
    fh = (hs - h0.astype(jnp.float32))[None, :, None, None]
    fw = (ws - w0.astype(jnp.float32))[None, None, :, None]

    x00 = x_nhwc[:, h0][:, :, w0]
    x01 = x_nhwc[:, h0][:, :, w1]
    x10 = x_nhwc[:, h1][:, :, w0]
    x11 = x_nhwc[:, h1][:, :, w1]
    top = x00 * (1.0 - fw) + x01 * fw
    bot = x10 * (1.0 - fw) + x11 * fw
    return top * (1.0 - fh) + bot * fh


def upsample_block_forward(x_nchw, enc_nchw, params, scale_factor, tile_h=None):
    N, Cx, Hx, Wx = x_nchw.shape
    _, Ce, H, W = enc_nchw.shape
    C2 = params["b1"].shape[0]
    assert (Hx * scale_factor, Wx * scale_factor) == (H, W)

    if tile_h is None:
        tile_h = 8 if H % 8 == 0 else H               # row tile (must divide H)
    assert H % tile_h == 0
    TH = tile_h

    # NCHW -> NHWC -> lane-flattened rows (N, H, W*C).  The torch channel
    # concat becomes a cheap lane-axis pack of the two flattened streams (the
    # channel-interleaved concat tensor is never built); the 2-row zero H-halo
    # (conv1 'same' pad + conv2 halo) fuses with this single layout pass.
    # W/channel 'same' padding lives in the Toeplitz weights.
    enc_flat = jnp.transpose(enc_nchw, (0, 2, 3, 1)).reshape(N, H, W * Ce)
    up = bilinear_upsample_align_corners(
        jnp.transpose(x_nchw, (0, 2, 3, 1)), scale_factor)     # (N, H, W, Cx)
    up_flat = up.reshape(N, H, W * Cx)
    cat = jnp.concatenate([enc_flat, up_flat], axis=-1)        # (N, H, W*(Ce+Cx))
    cat_p = jnp.pad(cat, ((0, 0), (2, 2), (0, 0)))

    # conv1 weights split along Cin (encoded part / upsampled part), turned
    # into Toeplitz row-operators, then re-stacked along K to match the
    # lane-packed input layout.
    w1, w2 = params["w1"], params["w2"]
    t1 = jnp.concatenate(
        [toeplitz_conv_weights(w1[:, :, :Ce, :], W),           # (3, W*Ce, W*C2)
         toeplitz_conv_weights(w1[:, :, Ce:, :], W)], axis=1)  # (3, W*(Ce+Cx), W*C2)
    t2 = toeplitz_conv_weights(w2, W)                          # (3, W*C2,      W*C2)
    b1r = jnp.tile(params["b1"], W).reshape(1, W * C2)
    b2r = jnp.tile(params["b2"], W).reshape(1, W * C2)
    wcin = W * (Ce + Cx)
    wc2 = W * C2

    kern = functools.partial(_fused_upblock_kernel, H=H, TH=TH, neg_slope=0.2)
    out_flat = pl.pallas_call(
        kern,
        out_shape=jax.ShapeDtypeStruct((N, H, wc2), cat.dtype),
        grid_spec=pltpu.PrefetchScalarGridSpec(
            num_scalar_prefetch=0,
            grid=(N, H // TH),
            in_specs=[
                pl.BlockSpec(memory_space=pl.ANY),             # cat_p (manual DMA)
                pl.BlockSpec((3, wcin, wc2), lambda n, r: (0, 0, 0)),
                pl.BlockSpec((3, wc2, wc2), lambda n, r: (0, 0, 0)),
                pl.BlockSpec((1, wc2), lambda n, r: (0, 0)),
                pl.BlockSpec((1, wc2), lambda n, r: (0, 0)),
            ],
            out_specs=pl.BlockSpec((1, TH, wc2), lambda n, r: (n, r, 0)),
            scratch_shapes=[
                pltpu.VMEM((TH + 4, wcin), jnp.float32),
                pltpu.SemaphoreType.DMA((1,)),
            ],
        ),
        compiler_params=pltpu.CompilerParams(
            dimension_semantics=("parallel", "parallel")),
    )(cat_p, t1, t2, b1r, b2r)

    out = out_flat.reshape(N, H, W, C2)
    return jnp.transpose(out, (0, 3, 1, 2))           # NHWC -> NCHW


# --------------------------- pure-JAX reference ----------------------------- #
def _ref_conv_lrelu(x_nhwc, w_hwio, b, neg_slope=0.2):
    y = lax.conv_general_dilated(
        x_nhwc, w_hwio, window_strides=(1, 1), padding="SAME",
        dimension_numbers=("NHWC", "HWIO", "NHWC"))
    y = y + b
    return jnp.where(y >= 0, y, neg_slope * y)


def _ref_forward(x_nchw, enc_nchw, params, scale_factor):
    x = jnp.transpose(x_nchw, (0, 2, 3, 1))
    enc = jnp.transpose(enc_nchw, (0, 2, 3, 1))
    up = bilinear_upsample_align_corners(x, scale_factor)
    concat = jnp.concatenate([enc, up], axis=-1)
    h = _ref_conv_lrelu(concat, params["w1"], params["b1"])
    h = _ref_conv_lrelu(h, params["w2"], params["b2"])
    return jnp.transpose(h, (0, 3, 1, 2))


# ---------------------------------- main ------------------------------------ #
if __name__ == "__main__":
    scale_factor = 2
    N = 2
    x_C, enc_C = 4, 4
    skip_input_channels = enc_C + x_C          # 8
    output_channels = 8
    Hx = Wx = 8                                # x spatial (pre-upsample)
    He = We = Hx * scale_factor                # encoded features spatial (16)

    key = jax.random.PRNGKey(0)
    kx, ke, kw1, kb1, kw2, kb2 = jax.random.split(key, 6)

    x = jax.random.normal(kx, (N, x_C, Hx, Wx), jnp.float32)
    encoded = jax.random.normal(ke, (N, enc_C, He, We), jnp.float32)

    # Conv2d weights in HWIO (as used by the NHWC conv), biases per channel.
    params = {
        "w1": 0.1 * jax.random.normal(
            kw1, (3, 3, skip_input_channels, output_channels), jnp.float32),
        "b1": 0.1 * jax.random.normal(kb1, (output_channels,), jnp.float32),
        "w2": 0.1 * jax.random.normal(
            kw2, (3, 3, output_channels, output_channels), jnp.float32),
        "b2": 0.1 * jax.random.normal(kb2, (output_channels,), jnp.float32),
    }

    out = upsample_block_forward(x, encoded, params, scale_factor)
    out = jax.block_until_ready(out)

    ref = jax.block_until_ready(_ref_forward(x, encoded, params, scale_factor))
    assert out.shape == (N, output_channels, He, We), out.shape
    assert jnp.allclose(out, ref, atol=1e-4, rtol=1e-4), "mismatch vs reference"

    print("KERNEL_OK")
</pallas_src>

<mosaic_0001>
module attributes {stable_mosaic.version = 11 : i64} {
  func.func @_fused_upblock_kernel(%arg0: i32, %arg1: i32, %arg2: memref<2x20x128xf32, #tpu.memory_space<any>>, %arg3: memref<3x128x128xf32, #tpu.memory_space<vmem>>, %arg4: memref<3x128x128xf32, #tpu.memory_space<vmem>>, %arg5: memref<1x128xf32, #tpu.memory_space<vmem>>, %arg6: memref<1x128xf32, #tpu.memory_space<vmem>>, %arg7: memref<1x8x128xf32, #tpu.memory_space<vmem>>, %arg8: memref<12x128xf32, #tpu.memory_space<vmem>>, %arg9: memref<1x!tpu.dma_semaphore, #tpu.memory_space<semaphore_mem>>) attributes {dimension_semantics = [#tpu.dimension_semantics<parallel>, #tpu.dimension_semantics<parallel>], iteration_bounds = array<i64: 2, 2>, scalar_prefetch = 0 : i64, scratch_operands = 2 : i64, tpu.core_type = #tpu.core_type<tc>, window_params = [{}, {pipeline_mode = #tpu.pipeline_mode<synchronous>, transform_indices = @transform_1, window_bounds = array<i64: 3, 128, 128>}, {pipeline_mode = #tpu.pipeline_mode<synchronous>, transform_indices = @transform_2, window_bounds = array<i64: 3, 128, 128>}, {pipeline_mode = #tpu.pipeline_mode<synchronous>, transform_indices = @transform_3, window_bounds = array<i64: 1, 128>}, {pipeline_mode = #tpu.pipeline_mode<synchronous>, transform_indices = @transform_4, window_bounds = array<i64: 1, 128>}, {transform_indices = @transform_5, window_bounds = array<i64: 1, 8, 128>}]} {
    %c8_i32 = arith.constant 8 : i32
    %0 = arith.muli %arg1, %c8_i32 : i32
    %1 = tpu.assume_multiple %0, 8 : i32
    %c0_i32 = arith.constant 0 : i32
    %c0_i32_0 = arith.constant 0 : i32
    %2 = tpu.memref_slice %arg2[%arg0, %1, %c0_i32_0] : memref<2x20x128xf32, #tpu.memory_space<any>> -> memref<1x12x128xf32, #tpu.memory_space<any>>
    %3 = tpu.memref_squeeze %2 : memref<1x12x128xf32, #tpu.memory_space<any>> -> memref<12x128xf32, #tpu.memory_space<any>>
    %4 = tpu.memref_slice %arg9[%c0_i32] : memref<1x!tpu.dma_semaphore, #tpu.memory_space<semaphore_mem>> -> memref<1x!tpu.dma_semaphore, #tpu.memory_space<semaphore_mem>>
    %5 = tpu.memref_squeeze %4 : memref<1x!tpu.dma_semaphore, #tpu.memory_space<semaphore_mem>> -> memref<!tpu.dma_semaphore, #tpu.memory_space<semaphore_mem>>
    tpu.enqueue_dma source(%3 : memref<12x128xf32, #tpu.memory_space<any>>) target(%arg8 : memref<12x128xf32, #tpu.memory_space<vmem>>) target_semaphore(%5 : memref<!tpu.dma_semaphore, #tpu.memory_space<semaphore_mem>>)
    %c0_i32_1 = arith.constant 0 : i32
    %c0_i32_2 = arith.constant 0 : i32
    %6 = tpu.memref_slice %arg2[%arg0, %1, %c0_i32_2] : memref<2x20x128xf32, #tpu.memory_space<any>> -> memref<1x12x128xf32, #tpu.memory_space<any>>
    %7 = tpu.memref_squeeze %6 : memref<1x12x128xf32, #tpu.memory_space<any>> -> memref<12x128xf32, #tpu.memory_space<any>>
    %8 = tpu.memref_slice %arg9[%c0_i32_1] : memref<1x!tpu.dma_semaphore, #tpu.memory_space<semaphore_mem>> -> memref<1x!tpu.dma_semaphore, #tpu.memory_space<semaphore_mem>>
    %9 = tpu.memref_squeeze %8 : memref<1x!tpu.dma_semaphore, #tpu.memory_space<semaphore_mem>> -> memref<!tpu.dma_semaphore, #tpu.memory_space<semaphore_mem>>
    tpu.wait_dma2 semaphore(%9 : memref<!tpu.dma_semaphore, #tpu.memory_space<semaphore_mem>>) src(%7 : memref<12x128xf32, #tpu.memory_space<any>>) dst(%arg8 : memref<12x128xf32, #tpu.memory_space<vmem>>)
    %c0 = arith.constant 0 : index
    %c0_3 = arith.constant 0 : index
    %10 = vector.load %arg8[%c0, %c0_3] : memref<12x128xf32, #tpu.memory_space<vmem>>, vector<12x128xf32>
    %c0_4 = arith.constant 0 : index
    %c0_5 = arith.constant 0 : index
    %11 = vector.load %arg5[%c0_4, %c0_5] : memref<1x128xf32, #tpu.memory_space<vmem>>, vector<1x128xf32>
    %12 = vector.shape_cast %11 : vector<1x128xf32> to vector<1x128xf32>
    %13 = vector.broadcast %12 : vector<1x128xf32> to vector<10x128xf32>
    %14 = vector.extract_strided_slice %10 {offsets = [0, 0], sizes = [10, 128], strides = [1, 1]} : vector<12x128xf32> to vector<10x128xf32>
    %c0_6 = arith.constant 0 : index
    %c0_7 = arith.constant 0 : index
    %c0_8 = arith.constant 0 : index
    %15 = vector.load %arg3[%c0_6, %c0_7, %c0_8] : memref<3x128x128xf32, #tpu.memory_space<vmem>>, vector<1x128x128xf32>
    %16 = vector.shape_cast %15 : vector<1x128x128xf32> to vector<128x128xf32>
    %cst = arith.constant dense<0.000000e+00> : vector<10x128xf32>
    %17 = tpu.matmul %14, %16, %cst {dimension_numbers = #tpu.dot_dimension_numbers<[1], [0], [0], [1], [0, 0, 1, 1], [], []>} : vector<10x128xf32>, vector<128x128xf32>, vector<10x128xf32> -> vector<10x128xf32>
    %18 = arith.addf %13, %17 : vector<10x128xf32>
    %19 = vector.extract_strided_slice %10 {offsets = [1, 0], sizes = [10, 128], strides = [1, 1]} : vector<12x128xf32> to vector<10x128xf32>
    %c1 = arith.constant 1 : index
    %c0_9 = arith.constant 0 : index
    %c0_10 = arith.constant 0 : index
    %20 = vector.load %arg3[%c1, %c0_9, %c0_10] : memref<3x128x128xf32, #tpu.memory_space<vmem>>, vector<1x128x128xf32>
    %21 = vector.shape_cast %20 : vector<1x128x128xf32> to vector<128x128xf32>
    %cst_11 = arith.constant dense<0.000000e+00> : vector<10x128xf32>
    %22 = tpu.matmul %19, %21, %cst_11 {dimension_numbers = #tpu.dot_dimension_numbers<[1], [0], [0], [1], [0, 0, 1, 1], [], []>} : vector<10x128xf32>, vector<128x128xf32>, vector<10x128xf32> -> vector<10x128xf32>
    %23 = arith.addf %18, %22 : vector<10x128xf32>
    %24 = vector.extract_strided_slice %10 {offsets = [2, 0], sizes = [10, 128], strides = [1, 1]} : vector<12x128xf32> to vector<10x128xf32>
    %c2 = arith.constant 2 : index
    %c0_12 = arith.constant 0 : index
    %c0_13 = arith.constant 0 : index
    %25 = vector.load %arg3[%c2, %c0_12, %c0_13] : memref<3x128x128xf32, #tpu.memory_space<vmem>>, vector<1x128x128xf32>
    %26 = vector.shape_cast %25 : vector<1x128x128xf32> to vector<128x128xf32>
    %cst_14 = arith.constant dense<0.000000e+00> : vector<10x128xf32>
    %27 = tpu.matmul %24, %26, %cst_14 {dimension_numbers = #tpu.dot_dimension_numbers<[1], [0], [0], [1], [0, 0, 1, 1], [], []>} : vector<10x128xf32>, vector<128x128xf32>, vector<10x128xf32> -> vector<10x128xf32>
    %28 = arith.addf %23, %27 : vector<10x128xf32>
    %cst_15 = arith.constant 0.000000e+00 : f32
    %29 = vector.broadcast %cst_15 : f32 to vector<10x128xf32>
    %30 = arith.cmpf oge, %28, %29 : vector<10x128xf32>
    %cst_16 = arith.constant 2.000000e-01 : f32
    %31 = vector.broadcast %cst_16 : f32 to vector<10x128xf32>
    %32 = arith.mulf %31, %28 : vector<10x128xf32>
    %33 = arith.select %30, %28, %32 : vector<10x128xi1>, vector<10x128xf32>
    %c8_i32_17 = arith.constant 8 : i32
    %34 = arith.muli %arg1, %c8_i32_17 : i32
    %c1_i32 = arith.constant 1 : i32
    %35 = arith.subi %34, %c1_i32 : i32
    %36 = tpu.iota {dimensions = array<i32: 0>} : vector<10x1xi32>
    %37 = vector.broadcast %35 : i32 to vector<10x1xi32>
    %38 = arith.addi %37, %36 : vector<10x1xi32>
    %c0_i32_18 = arith.constant 0 : i32
    %39 = vector.broadcast %c0_i32_18 : i32 to vector<10x1xi32>
    %40 = arith.cmpi sge, %38, %39 : vector<10x1xi32>
    %c16_i32 = arith.constant 16 : i32
    %41 = vector.broadcast %c16_i32 : i32 to vector<10x1xi32>
    %42 = arith.cmpi slt, %38, %41 : vector<10x1xi32>
    %43 = arith.andi %40, %42 : vector<10x1xi1>
    %cst_19 = arith.constant 0.000000e+00 : f32
    %44 = vector.shape_cast %43 : vector<10x1xi1> to vector<10x1xi1>
    %45 = vector.broadcast %44 : vector<10x1xi1> to vector<10x128xi1>
    %46 = vector.broadcast %cst_19 : f32 to vector<10x128xf32>
    %47 = arith.select %45, %33, %46 : vector<10x128xi1>, vector<10x128xf32>
    %c0_20 = arith.constant 0 : index
    %c0_21 = arith.constant 0 : index
    %48 = vector.load %arg6[%c0_20, %c0_21] : memref<1x128xf32, #tpu.memory_space<vmem>>, vector<1x128xf32>
    %49 = vector.shape_cast %48 : vector<1x128xf32> to vector<1x128xf32>
    %50 = vector.broadcast %49 : vector<1x128xf32> to vector<8x128xf32>
    %51 = vector.extract_strided_slice %47 {offsets = [0, 0], sizes = [8, 128], strides = [1, 1]} : vector<10x128xf32> to vector<8x128xf32>
    %c0_22 = arith.constant 0 : index
    %c0_23 = arith.constant 0 : index
    %c0_24 = arith.constant 0 : index
    %52 = vector.load %arg4[%c0_22, %c0_23, %c0_24] : memref<3x128x128xf32, #tpu.memory_space<vmem>>, vector<1x128x128xf32>
    %53 = vector.shape_cast %52 : vector<1x128x128xf32> to vector<128x128xf32>
    %cst_25 = arith.constant dense<0.000000e+00> : vector<8x128xf32>
    %54 = tpu.matmul %51, %53, %cst_25 {dimension_numbers = #tpu.dot_dimension_numbers<[1], [0], [0], [1], [0, 0, 1, 1], [], []>} : vector<8x128xf32>, vector<128x128xf32>, vector<8x128xf32> -> vector<8x128xf32>
    %55 = arith.addf %50, %54 : vector<8x128xf32>
    %56 = vector.extract_strided_slice %47 {offsets = [1, 0], sizes = [8, 128], strides = [1, 1]} : vector<10x128xf32> to vector<8x128xf32>
    %c1_26 = arith.constant 1 : index
    %c0_27 = arith.constant 0 : index
    %c0_28 = arith.constant 0 : index
    %57 = vector.load %arg4[%c1_26, %c0_27, %c0_28] : memref<3x128x128xf32, #tpu.memory_space<vmem>>, vector<1x128x128xf32>
    %58 = vector.shape_cast %57 : vector<1x128x128xf32> to vector<128x128xf32>
    %cst_29 = arith.constant dense<0.000000e+00> : vector<8x128xf32>
    %59 = tpu.matmul %56, %58, %cst_29 {dimension_numbers = #tpu.dot_dimension_numbers<[1], [0], [0], [1], [0, 0, 1, 1], [], []>} : vector<8x128xf32>, vector<128x128xf32>, vector<8x128xf32> -> vector<8x128xf32>
    %60 = arith.addf %55, %59 : vector<8x128xf32>
    %61 = vector.extract_strided_slice %47 {offsets = [2, 0], sizes = [8, 128], strides = [1, 1]} : vector<10x128xf32> to vector<8x128xf32>
    %c2_30 = arith.constant 2 : index
    %c0_31 = arith.constant 0 : index
    %c0_32 = arith.constant 0 : index
    %62 = vector.load %arg4[%c2_30, %c0_31, %c0_32] : memref<3x128x128xf32, #tpu.memory_space<vmem>>, vector<1x128x128xf32>
    %63 = vector.shape_cast %62 : vector<1x128x128xf32> to vector<128x128xf32>
    %cst_33 = arith.constant dense<0.000000e+00> : vector<8x128xf32>
    %64 = tpu.matmul %61, %63, %cst_33 {dimension_numbers = #tpu.dot_dimension_numbers<[1], [0], [0], [1], [0, 0, 1, 1], [], []>} : vector<8x128xf32>, vector<128x128xf32>, vector<8x128xf32> -> vector<8x128xf32>
    %65 = arith.addf %60, %64 : vector<8x128xf32>
    %cst_34 = arith.constant 0.000000e+00 : f32
    %66 = vector.broadcast %cst_34 : f32 to vector<8x128xf32>
    %67 = arith.cmpf oge, %65, %66 : vector<8x128xf32>
    %cst_35 = arith.constant 2.000000e-01 : f32
    %68 = vector.broadcast %cst_35 : f32 to vector<8x128xf32>
    %69 = arith.mulf %68, %65 : vector<8x128xf32>
    %70 = arith.select %67, %65, %69 : vector<8x128xi1>, vector<8x128xf32>
    %c0_36 = arith.constant 0 : index
    %c0_37 = arith.constant 0 : index
    %c0_38 = arith.constant 0 : index
    %71 = vector.load %arg7[%c0_36, %c0_37, %c0_38] : memref<1x8x128xf32, #tpu.memory_space<vmem>>, vector<1x8x128xf32>
    %72 = vector.shape_cast %71 : vector<1x8x128xf32> to vector<8x128xf32>
    %73 = vector.shape_cast %70 : vector<8x128xf32> to vector<1x8x128xf32>
    tpu.vector_store %arg7[%c0_36, %c0_37, %c0_38], %73 {strides = array<i32>} : memref<1x8x128xf32, #tpu.memory_space<vmem>>, vector<1x8x128xf32>,
    return
  }
  func.func @transform_1(%arg0: i32, %arg1: i32) -> (i32, i32, i32) {
    %c0_i32 = arith.constant 0 : i32
    %c0_i32_0 = arith.constant 0 : i32
    %c0_i32_1 = arith.constant 0 : i32
    %c0_i32_2 = arith.constant 0 : i32
    return %c0_i32, %c0_i32_0, %c0_i32_1 : i32, i32, i32
  }
  func.func @transform_2(%arg0: i32, %arg1: i32) -> (i32, i32, i32) {
    %c0_i32 = arith.constant 0 : i32
    %c0_i32_0 = arith.constant 0 : i32
    %c0_i32_1 = arith.constant 0 : i32
    %c0_i32_2 = arith.constant 0 : i32
    return %c0_i32, %c0_i32_0, %c0_i32_1 : i32, i32, i32
  }
  func.func @transform_3(%arg0: i32, %arg1: i32) -> (i32, i32) {
    %c0_i32 = arith.constant 0 : i32
    %c0_i32_0 = arith.constant 0 : i32
    %c0_i32_1 = arith.constant 0 : i32
    return %c0_i32, %c0_i32_0 : i32, i32
  }
  func.func @transform_4(%arg0: i32, %arg1: i32) -> (i32, i32) {
    %c0_i32 = arith.constant 0 : i32
    %c0_i32_0 = arith.constant 0 : i32
    %c0_i32_1 = arith.constant 0 : i32
    return %c0_i32, %c0_i32_0 : i32, i32
  }
  func.func @transform_5(%arg0: i32, %arg1: i32) -> (i32, i32, i32) {
    %c0_i32 = arith.constant 0 : i32
    %c0_i32_0 = arith.constant 0 : i32
    return %arg0, %arg1, %c0_i32 : i32, i32, i32
  }
}

</mosaic_0001>

<bundles_post_ra>
// kernel: tpu_custom_call.1
= control target key start
LH: loop header
LB: loop body
LE: loop exit
PB: predicated region body
PF: predicated region fallthrough
CT: control target
= control target key end

     0   :  { %10 = vsyncpa [#allocation5], 0  ;;  %s1174_s0 = inlined_call_operand.vmem [shape: f32[2,20,128], index: 0, kind: input, shape index: {}]   ;;  %s1175_s1 = inlined_call_operand.hbm [shape: f32[3,128,128], index: 1, kind: input, shape index: {}]   ;;  %s1176_s2 = inlined_call_operand.hbm [shape: f32[3,128,128], index: 2, kind: input, shape index: {}]   ;;  %s1177_s3 = inlined_call_operand.vmem [shape: f32[1,128], index: 3, kind: input, shape index: {}]   ;;  %s1178_s4 = inlined_call_operand.vmem [shape: f32[1,128], index: 4, kind: input, shape index: {}]   ;;  %s1179_s5 = inlined_call_operand.hbm [shape: f32[2,16,128], index: 5, kind: output, shape index: {}]  }
   0x1   :  { %11 = vsyncpa [#allocation8], 0 }
   0x2   :  { %12 = vsyncpa [#allocation6], 0 }
   0x3   :  { %14 = vsyncpa [#allocation6 + $0x1], 0  ;;  %s996_s18 = smov 0   ;;  %s998_s19 = smov 0  }
   0x4   :  { %s1000_s20 = smov 0   ;;  %s1002_s21 = smov 0  }
   0x5   :  { %s1004_s22 = smov 0   ;;  %s1006_s23 = smov 0  }
   0x6   :  { %s1008_s24 = smov 0   ;;  %s1010_s25 = smov 0  }
   0x7 LB: > { %1183 = sst [smem:[#allocation15_spill]] %s956_s24  ;;  %s681_s26 = sadd.s32 4294967295, %s960_s25   ;;  %s960_s25 = sphi %s1010_s25, %s20_s25   ;;  %s956_s24 = sphi %s1008_s24, %s1192_s24   ;;  %s952_s23 = sphi %s1006_s23, %s1197_s23   ;;  %s948_s22 = sphi %s1004_s22, %s1190_s22   ;;  %s944_s21 = sphi %s1002_s21, %s1196_s21   ;;  %s940_s20 = sphi %s1000_s20, %s1195_s20   ;;  %s936_s19 = sphi %s998_s19, %s1194_s19   ;;  %s932_s18 = sphi %s996_s18, %s1193_s18  }
   0x8   : > { %s682_s27 = sadd.s32 4294967294, %s960_s25   ;;  %s29_s28 = sadd.s32 1, %s952_s23 }
   0x9   : > { %s32_s29 = sadd.s32 1, %s956_s24  ;;  %p30_p0 = scmp.ge.s32.totalorder %s29_s28, 2 }
   0xa   : > { %s125_s30 = sadd.s32 1, %s940_s20  ;;  %p135_p1 = scmp.ne.s32.totalorder %s940_s20, %s936_s19 }
   0xb   : > { %p136_p2 = scmp.eq.s32.totalorder %s681_s26, 3  ;;  %s1199_s28 = smov (%p30_p0, %s29_s28), 0 }
   0xc   : > { %1184 = sst [smem:[#allocation16_spill]] %s1199_s28  ;;  %s1201_s29 = smov (!%p30_p0, %s32_s29), %s956_s24 }
   0xd   : > { %s121_s6 = ssub.s32 %s952_s23, %s1199_s28  ;;  %p1048_p3 = por %p136_p2, %p135_p1 }
   0xe   : > { %p34_p4 = scmp.ge.s32.totalorder %s1201_s29, 2  ;;  %p141_p5 = scmp.ne.s32.totalorder %s936_s19, %s932_s18 }
   0xf   : > { %p142_p6 = scmp.eq.s32.totalorder %s682_s27, 3  ;;  %p683_p7 = scmp.ge.s32.totalorder %s960_s25, 1 }
  0x10   : > { %s1203_s29 = smov (%p34_p4, %s1201_s29), 0  ;;  %p149_p9 = scmp.lt.s32.totalorder %s960_s25, 5 }
  0x11   : > { %1186 = sst [smem:[#allocation17_spill]] %s1203_s29  ;;  %p1057_p8 = por %p142_p6, %p141_p5 }
  0x12   : > { %s120_s9 = ssub.s32 %s956_s24, %s1203_s29  ;;  %p1064_p10 = pnand %p683_p7, %p149_p9 }
  0x13   : > { %s122_s10 = sor.u32 %s121_s6, %s120_s9  ;;  %p1068_p12 = scmp.eq.s32.totalorder %s681_s26, 0 }
  0x14   : > { %p123_p11 = scmp.eq.s32.totalorder %s122_s10, 0  ;;  %p710_p13 = pneg %p1064_p10 }
  0x15   : > { %s160_s15 = sshll.u32 %s1175_s1, 4  ;;  %s962_s17 = smov [#allocation4]   ;;  %s161_s15 = int_to_ptr.hbm [resolvable:$true] %s160_s15 }
  0x16   : > { %s1078_s16 = scalar_select %p123_p11, %s940_s20, %s125_s30  }
  0x17   : > { %s162_s27 = sshll.u32 %s962_s17, 4  ;;  %p711_p0 = pnand %p1068_p12, %p710_p13  ;;  %s163_s27 = int_to_ptr.vmem [resolvable:$true] %s162_s27 }
  0x18   : > { %s963_s6 = smov 128   ;;  %s964_s26 = smov 8  }
  0x19   : > { %713 = dma.hbm_to_vmem [thread:$0]  (!%p711_p0), %s161_s15, 6144, %s163_s27, [#allocation5], %s963_s6, %s963_s6, %s964_s26  }
  0x1a   : > { %s174_s29 = sshll.u32 %s1176_s2, 4  ;;  %s965_s28 = smov [#allocation7]   ;;  %s175_s29 = int_to_ptr.hbm [resolvable:$true] %s174_s29 }
  0x1b   : > { %s176_s24 = sshll.u32 %s965_s28, 4  ;;  %198 = sbr.rel (%p1064_p10) target bundleno = 362 (0x16a), region = 36  ;;  %s177_s24 = int_to_ptr.vmem [resolvable:$true] %s176_s24 }
  0x1c   : > { %716 = dma.hbm_to_vmem [thread:$0]  (!%p711_p0), %s175_s29, 6144, %s177_s24, [#allocation8], %s963_s6, %s963_s6, %s964_s26  }
  0x20   : > { %917 = dma.done.wait (%p1068_p12), [#allocation5], 6144  }
  0x21   : > { %919 = vsyncadd (%p1068_p12), [#allocation5], 4294961152 }
  0x22   : > { %921 = dma.done.wait (%p1068_p12), [#allocation8], 6144  }
  0x23   : > { %923 = vsyncadd (%p1068_p12), [#allocation8], 4294961152  ;;  %s222_s24 = sand.u32 1, %s936_s19   ;;  %s690_s28 = sshll.u32 %s944_s21, 3 }
  0x24   : > { %s1099_s29 = sshll.u32 %s222_s24, 3  ;;  %s226_s30 = smul.u32 24, %s948_s22 }
  0x25   : > { %s224_s12 = scalar_lea.vmem [#allocation9], %s1099_s29 }
  0x26   : > { %s227_s11 = sadd.s32 %s690_s28, %s226_s30 }
  0x27   : > { %s228_s15 = scalar_lea.vmem %s1174_s0, %s227_s11 }
  0x28   : > { %v241_v0 = vld [vmem:[%s228_s15] sm:$0xff]  ;;  %v691_v1 = vld [vmem:[%s228_s15 + $0x8] sm:$0xf] }
  0x29   : > { %242 = vst [vmem:[#allocation2] sm:$0xff] %v241_v0 }
  0x2a   : > { %254 = vst [vmem:[#allocation2 + $0x8] sm:$0xf] %v691_v1 }
  0x2b   : > { %258 = vsyncadd [#allocation3], 192 }
  0x2c   : > { %924 = dma.done.wait [#allocation3], 192 }
  0x2d   : > { %925 = vsyncadd [#allocation3], 4294967104  ;;  %v375_v2 = vld [vmem:[#allocation4 + $0x178] sm:$0xff]  ;;  %v374_v4 = vld [vmem:[#allocation4 + $0x170] sm:$0xff]  ;;  %vm376_vm0 = vcmask 1045504   ;;  %vm328_vm1 = vcmask 1046528  }
  0x2e   : > { %v283_v3 = vld [vmem:[#allocation4 + $0x78] sm:$0xff]  ;;  %382 = vmatpush.msra.mxu2 %v375_v2  ;;  %v282_v5 = vld [vmem:[#allocation4 + $0x70] sm:$0xff]  ;;  %v373_v7 = vld [vmem:[#allocation4 + $0x168] sm:$0xff]  ;;  %s692_s17 = sadd.s32 4294967295, %s690_s28  ;;  %s695_s26 = sshll.u32 %s948_s22, 1 }
  0x2f   : > { %284 = vmatpush.msra.mxu0 %v283_v3  ;;  %v325_v6 = vld [vmem:[#allocation4 + $0xf8] sm:$0xff]  ;;  %v281_v8 = vld [vmem:[#allocation4 + $0x68] sm:$0xff]  ;;  %v324_v9 = vld [vmem:[#allocation4 + $0xf0] sm:$0xff]  ;;  %s574_s9 = sadd.s32 %s944_s21, %s695_s26  ;;  %s578_s21 = sshll.u32 %s224_s12, 4  ;;  %s579_s21 = int_to_ptr.vmem [resolvable:$true] %s578_s21 }
  0x30   : > { %334 = vmatpush.msra.mxu1 %v325_v6  ;;  %383 = vmatpush.msra.mxu2 %v374_v4  ;;  %v323_v10 = vld [vmem:[#allocation4 + $0xe8] sm:$0xff]  ;;  %v372_v11 = vld [vmem:[#allocation4 + $0x160] sm:$0xff]  ;;  %v371_v14 = vld [vmem:[#allocation4 + $0x158] sm:$0xff]  ;;  %s696_s30 = sshll.u32 %s574_s9, 3  ;;  %s564_s15 = scalar_lea.sflag [#allocation6], %s222_s24 }
  0x31   : > { %285 = vmatpush.msra.mxu0 %v282_v5  ;;  %v280_v12 = vld [vmem:[#allocation4 + $0x60] sm:$0xff]  ;;  %v279_v15 = vld [vmem:[#allocation4 + $0x58] sm:$0xff]  ;;  %v370_v17 = vld [vmem:[#allocation4 + $0x150] sm:$0xff]  ;;  %s576_s14 = scalar_lea.hbm %s1179_s5, %s696_s30  ;;  %s876_s9 = scalar_lea.hbm %s1179_s5, 32 }
  0x32   : > { %335 = vmatpush.msra.mxu1 %v324_v9  ;;  %384 = vmatpush.msra.mxu2 %v373_v7  ;;  %v322_v13 = vld [vmem:[#allocation4 + $0xe0] sm:$0xff]  ;;  %v321_v16 = vld [vmem:[#allocation4 + $0xd8] sm:$0xff]  ;;  %v278_v18 = vld [vmem:[#allocation4 + $0x50] sm:$0xff]  ;;  %s580_s22 = sshll.u32 %s576_s14, 4  ;;  %s581_s22 = int_to_ptr.hbm [resolvable:$true] %s580_s22 }
  0x33   : > { %286 = vmatpush.msra.mxu0 %v281_v8  ;;  %v320_v19 = vld [vmem:[#allocation4 + $0xd0] sm:$0xff]  ;;  %v369_v20 = vld [vmem:[#allocation4 + $0x148] sm:$0xff]  ;;  %v368_v23 = vld [vmem:[#allocation4 + $0x140] sm:$0xff] }
  0x34   : > { %336 = vmatpush.msra.mxu1 %v323_v10  ;;  %385 = vmatpush.msra.mxu2 %v372_v11  ;;  %v277_v21 = vld [vmem:[#allocation4 + $0x48] sm:$0xff]  ;;  %v276_v24 = vld [vmem:[#allocation4 + $0x40] sm:$0xff]  ;;  %v367_v26 = vld [vmem:[#allocation4 + $0x138] sm:$0xff] }
  0x35   : > { %287 = vmatpush.msra.mxu0 %v280_v12  ;;  %v319_v22 = vld [vmem:[#allocation4 + $0xc8] sm:$0xff]  ;;  %v318_v25 = vld [vmem:[#allocation4 + $0xc0] sm:$0xff]  ;;  %v275_v27 = vld [vmem:[#allocation4 + $0x38] sm:$0xff] }
  0x36   : > { %337 = vmatpush.msra.mxu1 %v322_v13  ;;  %386 = vmatpush.msra.mxu2 %v371_v14  ;;  %v317_v28 = vld [vmem:[#allocation4 + $0xb8] sm:$0xff]  ;;  %v366_v29 = vld [vmem:[#allocation4 + $0x130] sm:$0xff]  ;;  %v365_v34 = vld [vmem:[#allocation4 + $0x128] sm:$0xff] }
  0x37   : > { %288 = vmatpush.msra.mxu0 %v279_v15  ;;  %v274_v30 = vld [vmem:[#allocation4 + $0x30] sm:$0xff]  ;;  %v451_v32 = vld [vmem:[#allocation7 + $0x78] sm:$0xff]  ;;  %v273_v35 = vld [vmem:[#allocation4 + $0x28] sm:$0xff] }
  0x38   : > { %338 = vmatpush.msra.mxu1 %v321_v16  ;;  %387 = vmatpush.msra.mxu2 %v370_v17  ;;  %v316_v31 = vld [vmem:[#allocation4 + $0xb0] sm:$0xff]  ;;  %v315_v36 = vld [vmem:[#allocation4 + $0xa8] sm:$0xff]  ;;  %v364_v38 = vld [vmem:[#allocation4 + $0x120] sm:$0xff] }
  0x39   : > { %289 = vmatpush.msra.mxu0 %v278_v18  ;;  %v450_v33 = vld [vmem:[#allocation7 + $0x70] sm:$0xff]  ;;  %452 = vmatpush.msra.mxu3 %v451_v32  ;;  %v449_v37 = vld [vmem:[#allocation7 + $0x68] sm:$0xff]  ;;  %v272_v39 = vld [vmem:[#allocation4 + $0x20] sm:$0xff] }
  0x3a   : > { %339 = vmatpush.msra.mxu1 %v320_v19  ;;  %388 = vmatpush.msra.mxu2 %v369_v20  ;;  %v363_v40 = vld [vmem:[#allocation4 + $0x118] sm:$0xff]  ;;  %v314_v41 = vld [vmem:[#allocation4 + $0xa0] sm:$0xff]  ;;  %v262_v44 = vld [vmem:[#allocation2] sm:$0xff] }
  0x3b   : > { %290 = vmatpush.msra.mxu0 %v277_v21  ;;  %453 = vmatpush.msra.mxu3 %v450_v33  ;;  %v448_v42 = vld [vmem:[#allocation7 + $0x60] sm:$0xff]  ;;  %v271_v43 = vld [vmem:[#allocation4 + $0x18] sm:$0xff]  ;;  %v362_v46 = vld [vmem:[#allocation4 + $0x110] sm:$0xff]  ;;  %v377_v51 = vrot.slane %v262_v44, 2  ;;  %v329_v57 = vrot.slane %v262_v44, 1 }
  0x3c   : > { %340 = vmatpush.msra.mxu1 %v319_v22  ;;  %389 = vmatpush.msra.mxu2 %v368_v23  ;;  %v1108_v45 = vld [vmem:[#allocation2 + $0x8] sm:$0xf]  ;;  %v270_v49 = vld [vmem:[#allocation4 + $0x10] sm:$0xff]  ;;  %v361_v54 = vld [vmem:[#allocation4 + $0x108] sm:$0xff] }
  0x3d   : > { %291 = vmatpush.msra.mxu0 %v276_v24  ;;  %454 = vmatpush.msra.mxu3 %v449_v37  ;;  %v313_v47 = vld [vmem:[#allocation4 + $0x98] sm:$0xff]  ;;  %v312_v50 = vld [vmem:[#allocation4 + $0x90] sm:$0xff]  ;;  %v378_v52 = vrot.slane %v1108_v45, 2  ;;  %v269_v55 = vld [vmem:[#allocation4 + $0x8] sm:$0xff]  ;;  %v330_v58 = vrot.slane %v1108_v45, 1 }
  0x3e   : > { %341 = vmatpush.msra.mxu1 %v318_v25  ;;  %390 = vmatpush.msra.mxu2 %v367_v26  ;;  %v447_v48 = vld [vmem:[#allocation7 + $0x58] sm:$0xff]  ;;  %v446_v53 = vld [vmem:[#allocation7 + $0x50] sm:$0xff]  ;;  %v311_v56 = vld [vmem:[#allocation4 + $0x88] sm:$0xff] }
  0x3f   : > { %292 = vmatpush.msra.mxu0 %v275_v27  ;;  %455 = vmatpush.msra.mxu3 %v448_v42  ;;  %v445_v59 = vld [vmem:[#allocation7 + $0x48] sm:$0xff]  ;;  %v360_v60 = vld [vmem:[#allocation4 + $0x100] sm:$0xff]  ;;  %v379_v62 = vsel %vm376_vm0, %v377_v51, %v378_v52  ;;  %v489_v0 = vld [vmem:[#allocation7 + $0xf8] sm:$0xff]  ;;  %v331_v1 = vsel %vm328_vm1, %v329_v57, %v330_v58  ;;  %v414_v42 = vlaneseq }
  0x40   : > { %342 = vmatpush.msra.mxu1 %v317_v28  ;;  %391 = vmatpush.msra.mxu2 %v366_v29  ;;  %v268_v61 = vld [vmem:[#allocation4] sm:$0xff]  ;;  %v533_v3 = vld [vmem:[#allocation7 + $0x178] sm:$0xff]  ;;  %v488_v4 = vld [vmem:[#allocation7 + $0xf0] sm:$0xff] }
  0x41   : > { %293 = vmatpush.msra.mxu0 %v274_v30  ;;  %456 = vmatpush.msra.mxu3 %v447_v48  ;;  %v310_v63 = vld [vmem:[#allocation4 + $0x80] sm:$0xff]  ;;  %v443_v5 = vld [vmem:[#allocation7 + $0x38] sm:$0xff]  ;;  %v532_v6 = vld [vmem:[#allocation7 + $0x170] sm:$0xff] }
  0x42   : > { %343 = vmatpush.msra.mxu1 %v316_v31  ;;  %392 = vmatpush.msra.mxu2 %v365_v34  ;;  %v444_v2 = vld [vmem:[#allocation7 + $0x40] sm:$0xff]  ;;  %v487_v7 = vld [vmem:[#allocation7 + $0xe8] sm:$0xff]  ;;  %v442_v8 = vld [vmem:[#allocation7 + $0x30] sm:$0xff] }
  0x43   : > { %294 = vmatpush.msra.mxu0 %v273_v35  ;;  %457 = vmatpush.msra.mxu3 %v446_v53  ;;  %v531_v9 = vld [vmem:[#allocation7 + $0x168] sm:$0xff]  ;;  %v486_v10 = vld [vmem:[#allocation7 + $0xe0] sm:$0xff]  ;;  %v485_v13 = vld [vmem:[#allocation7 + $0xd8] sm:$0xff] }
  0x44   : > { %344 = vmatpush.msra.mxu1 %v315_v36  ;;  %393 = vmatpush.msra.mxu2 %v364_v38  ;;  %v530_v11 = vld [vmem:[#allocation7 + $0x160] sm:$0xff]  ;;  %v441_v12 = vld [vmem:[#allocation7 + $0x28] sm:$0xff]  ;;  %v529_v14 = vld [vmem:[#allocation7 + $0x158] sm:$0xff] }
  0x45   : > { %295 = vmatpush.msra.mxu0 %v272_v39  ;;  %458 = vmatpush.msra.mxu3 %v445_v59  ;;  %v440_v15 = vld [vmem:[#allocation7 + $0x20] sm:$0xff]  ;;  %v484_v16 = vld [vmem:[#allocation7 + $0xd0] sm:$0xff]  ;;  %v439_v18 = vld [vmem:[#allocation7 + $0x18] sm:$0xff] }
  0x46   : > { %345 = vmatpush.msra.mxu1 %v314_v41  ;;  %394 = vmatpush.msra.mxu2 %v363_v40  ;;  %v528_v17 = vld [vmem:[#allocation7 + $0x150] sm:$0xff]  ;;  %v483_v19 = vld [vmem:[#allocation7 + $0xc8] sm:$0xff]  ;;  %v482_v22 = vld [vmem:[#allocation7 + $0xc0] sm:$0xff] }
  0x47   : > { %296 = vmatpush.msra.mxu0 %v271_v43  ;;  %459 = vmatpush.msra.mxu3 %v444_v2  ;;  %v527_v20 = vld [vmem:[#allocation7 + $0x148] sm:$0xff]  ;;  %v438_v21 = vld [vmem:[#allocation7 + $0x10] sm:$0xff]  ;;  %v526_v23 = vld [vmem:[#allocation7 + $0x140] sm:$0xff] }
  0x48   : > { %346 = vmatpush.msra.mxu1 %v313_v47  ;;  %395 = vmatpush.msra.mxu2 %v362_v46  ;;  %v437_v24 = vld [vmem:[#allocation7 + $0x8] sm:$0xff]  ;;  %v481_v25 = vld [vmem:[#allocation7 + $0xb8] sm:$0xff]  ;;  %v436_v27 = vld [vmem:[#allocation7] sm:$0xff] }
  0x49   : > { %297 = vmatpush.msra.mxu0 %v270_v49  ;;  %460 = vmatpush.msra.mxu3 %v443_v5  ;;  %v525_v26 = vld [vmem:[#allocation7 + $0x138] sm:$0xff]  ;;  %v480_v28 = vld [vmem:[#allocation7 + $0xb0] sm:$0xff]  ;;  %v479_v30 = vld [vmem:[#allocation7 + $0xa8] sm:$0xff] }
  0x4a   : > { %347 = vmatpush.msra.mxu1 %v312_v50  ;;  %396 = vmatpush.msra.mxu2 %v361_v54  ;;  %v524_v29 = vld [vmem:[#allocation7 + $0x130] sm:$0xff]  ;;  %v523_v31 = vld [vmem:[#allocation7 + $0x128] sm:$0xff]  ;;  %v478_v32 = vld [vmem:[#allocation7 + $0xa0] sm:$0xff] }
  0x4b   : > { %298 = vmatpush.msra.mxu0 %v269_v55  ;;  %461 = vmatpush.msra.mxu3 %v442_v8  ;;  %v522_v33 = vld [vmem:[#allocation7 + $0x120] sm:$0xff]  ;;  %v477_v34 = vld [vmem:[#allocation7 + $0x98] sm:$0xff]  ;;  %v476_v36 = vld [vmem:[#allocation7 + $0x90] sm:$0xff] }
  0x4c   : > { %348 = vmatpush.msra.mxu1 %v311_v56  ;;  %397 = vmatpush.msra.mxu2 %v360_v60  ;;  %v521_v35 = vld [vmem:[#allocation7 + $0x118] sm:$0xff]  ;;  %v520_v37 = vld [vmem:[#allocation7 + $0x110] sm:$0xff]  ;;  %v475_v38 = vld [vmem:[#allocation7 + $0x88] sm:$0xff] }
  0x4d   : > { %299 = vmatpush.msra.mxu0 %v268_v61  ;;  %398 = vmatmul.f32.vlgmr.msra.gmra.mxu2 %v379_v62  ;;  %v519_v39 = vld [vmem:[#allocation7 + $0x108] sm:$0xff]  ;;  %v474_v40 = vld [vmem:[#allocation7 + $0x80] sm:$0xff]  ;;  %v794_v43 = vld [vmem:[%s1177_s3] ss:$0 sm:$0xff] }
  0x4e   : > { %300 = vmatmul.f32.vlgmr.msra.gmra.mxu0 %v262_v44  ;;  %349 = vmatpush.msra.mxu1 %v310_v63  ;;  %v518_v41 = vld [vmem:[#allocation7 + $0x100] sm:$0xff]  ;;  %v415_v44 = vshrl.u32 %v414_v42, 7 }
  0x4f   : > { %496 = vmatpush.msrb.mxu0 %v489_v0  ;;  %350 = vmatmul.f32.vlgmr.msra.gmra.mxu1 %v331_v1 }
  0x50   : > { %538 = vmatpush.msrb.mxu1 %v533_v3  ;;  %462 = vmatpush.msra.mxu3 %v441_v12 }
  0x51   : > { %497 = vmatpush.msrb.mxu0 %v488_v4 }
  0x52   : > { %539 = vmatpush.msrb.mxu1 %v532_v6  ;;  %463 = vmatpush.msra.mxu3 %v440_v15 }
  0x53   : > { %498 = vmatpush.msrb.mxu0 %v487_v7 }
  0x54   : > { %540 = vmatpush.msrb.mxu1 %v531_v9  ;;  %464 = vmatpush.msra.mxu3 %v439_v18  ;;  %v795_v9 = vld [vmem:[%s1178_s4] ss:$0 sm:$0xff] }
  0x55   : > { %499 = vmatpush.msrb.mxu0 %v486_v10  ;;  %401 = vmatmul.f32.gmra.mxu2 %v378_v52  ;;  %v416_v52 = vadd.s32 8, %v415_v44 }
  0x56   : > { %303 = vmatmul.f32.gmra.mxu0 %v1108_v45  ;;  %541 = vmatpush.msrb.mxu1 %v530_v11  ;;  %v417_v45 = vstv %s692_s17  ;;  %s870_s17 = sshra.s32 %s581_s22, 4  ;;  %s871_s17 = int_to_ptr.hbm [resolvable:$true] %s870_s17 }
  0x57   : > { %353 = vmatmul.f32.gmra.mxu1 %v330_v58  ;;  %500 = vmatpush.msrb.mxu0 %v485_v13  ;;  %v418_v49 = vadd.s32 %v417_v45, %v415_v44  ;;  %v419_v58 = vadd.s32 %v417_v45, %v416_v52  ;;  %s872_s27 = scalar_lea.hbm %s871_s17, 8  ;;  %p877_p5 = scmp.lt.s32.totalorder %s871_s17, %s1179_s5 }
  0x58   : > { %542 = vmatpush.msrb.mxu1 %v529_v14  ;;  %465 = vmatpush.msra.mxu3 %v438_v21  ;;  %p873_p1 = scmp.ne.s32.totalorder %s871_s17, %s872_s27  ;;  %p878_p6 = scmp.lt.s32.totalorder %s876_s9, %s872_s27 }
  0x59   : > { %501 = vmatpush.msrb.mxu0 %v484_v16  ;;  %vm420_vm2 = vcmp.ge.s32.totalorder %v418_v49, 0  ;;  %vm422_vm3 = vcmp.lt.s32.totalorder %v418_v49, 16  ;;  %vm421_vm6 = vcmp.ge.s32.totalorder %v419_v58, 0  ;;  %vm423_vm7 = vcmp.lt.s32.totalorder %v419_v58, 16 }
  0x5a   : > { %543 = vmatpush.msrb.mxu1 %v528_v17  ;;  %466 = vmatpush.msra.mxu3 %v437_v24  ;;  %vm424_vm5 = vmand %vm420_vm2, %vm422_vm3  ;;  %p874_p2 = pnand %p873_p1, %p1048_p3  ;;  %p879_p7 = por %p878_p6, %p877_p5 }
  0x5b   : > { %502 = vmatpush.msrb.mxu0 %v483_v19  ;;  %vm425_vm9 = vmand %vm421_vm6, %vm423_vm7 }
  0x5c   : > { %544 = vmatpush.msrb.mxu1 %v527_v20  ;;  %467 = vmatpush.msra.mxu3 %v436_v27  ;;  %p875_p4 = pneg %p874_p2 }
  0x5d   : > { %503 = vmatpush.msrb.mxu0 %v482_v22 }
  0x5e   : > { %545 = vmatpush.msrb.mxu1 %v526_v23  ;;  %p880_p9 = pnand %p879_p7, %p875_p4 }
  0x5f   : > { %504 = vmatpush.msrb.mxu0 %v481_v25 }
  0x60   : > { %546 = vmatpush.msrb.mxu1 %v525_v26 }
  0x61   : > { %505 = vmatpush.msrb.mxu0 %v480_v28 }
  0x62   : > { %547 = vmatpush.msrb.mxu1 %v524_v29 }
  0x63   : > { %506 = vmatpush.msrb.mxu0 %v479_v30 }
  0x64   : > { %548 = vmatpush.msrb.mxu1 %v523_v31 }
  0x65   : > { %507 = vmatpush.msrb.mxu0 %v478_v32 }
  0x66   : > { %549 = vmatpush.msrb.mxu1 %v522_v33 }
  0x67   : > { %508 = vmatpush.msrb.mxu0 %v477_v34 }
  0x68   : > { %550 = vmatpush.msrb.mxu1 %v521_v35 }
  0x69   : > { %509 = vmatpush.msrb.mxu0 %v476_v36 }
  0x6a   : > { %551 = vmatpush.msrb.mxu1 %v520_v37 }
  0x6b   : > { %510 = vmatpush.msrb.mxu0 %v475_v38 }
  0x6c   : > { %552 = vmatpush.msrb.mxu1 %v519_v39 }
  0x6d   : > { %511 = vmatpush.msrb.mxu0 %v474_v40 }
  0x6e   : > { %553 = vmatpush.msrb.mxu1 %v518_v41 }
  0xcb   : > { %v301_v46 = vpop.f32.mrf.mxu0 }
  0xcc   : > { %v307_v47 = vadd.f32 %v794_v43, %v301_v46  ;;  %v351_v48 = vpop.f32.mrf.mxu1 }
  0xce   : > { %v357_v50 = vadd.f32 %v351_v48, %v307_v47 }
  0xd0   : > { %v399_v51 = vpop.f32.mrf.mxu2 }
  0xd1   : > { %v405_v53 = vadd.f32 %v399_v51, %v357_v50 }
  0xd3   : > { %v304_v54 = vpop.f32.mrf.mxu0  ;;  %v409_v55 = vmul.f32 0.2, %v405_v53  ;;  %vm407_vm4 = vcmp.ge.f32.partialorder %v405_v53, 0.0 }
  0xd4   : > { %v308_v56 = vadd.f32 %v794_v43, %v304_v54  ;;  %v354_v57 = vpop.f32.mrf.mxu1 }
  0xd5   : > { %v411_v60 = vsel %vm407_vm4, %v405_v53, %v409_v55 }
  0xd6   : > { %v358_v59 = vadd.f32 %v354_v57, %v308_v56  ;;  %693 = vmatmul.msk.f32.vlgmr.msra.gmra.mxu3 %vm424_vm5, %v411_v60  ;;  %v430_v0 = vsel %vm424_vm5, %v411_v60, 0.0 }
  0xd7   : > { %v492_v3 = vrot.slane %v430_v0, 1  ;;  %v534_v4 = vrot.slane %v430_v0, 2 }
  0xd8   : > { %v402_v61 = vpop.f32.mrf.mxu2 }
  0xd9   : > { %v406_v62 = vadd.f32 %v402_v61, %v358_v59 }
  0xdb   : > { %vm408_vm8 = vcmp.ge.f32.partialorder %v406_v62, 0.0  ;;  %v410_v63 = vmul.f32 0.2, %v406_v62 }
  0xdd   : > { %v412_v1 = vsel %vm408_vm8, %v406_v62, %v410_v63 }
  0xde   : > { %v431_v2 = vsel %vm425_vm9, %v412_v1, 0.0 }
  0xdf   : > { %v493_v5 = vrot.slane %v431_v2, 1  ;;  %v535_v6 = vrot.slane %v431_v2, 2 }
  0xe1   : > { %v494_v7 = vsel %vm328_vm1, %v492_v3, %v493_v5  ;;  %v536_v8 = vsel %vm376_vm0, %v534_v4, %v535_v6 }
  0xe2   : > { %512 = vmatmul.f32.vlgmr.msrb.gmra.mxu0 %v494_v7  ;;  %554 = vmatmul.f32.vlgmr.msrb.gmra.mxu1 %v536_v8 }
 0x159   : > { %v469_v10 = vpop.f32.mrf.mxu3 }
 0x15a   : > { %v472_v11 = vadd.f32 %v795_v9, %v469_v10 }
 0x15f   : > { %v513_v12 = vpop.f32.mrf.mxu0  ;;  %v555_v14 = vpop.f32.mrf.mxu1 }
 0x160   : > { %v516_v13 = vadd.f32 %v513_v12, %v472_v11 }
 0x162   : > { %v558_v15 = vadd.f32 %v555_v14, %v516_v13 }
 0x164   : > { %vm559_vm10 = vcmp.ge.f32.partialorder %v558_v15, 0.0  ;;  %v560_v16 = vmul.f32 0.2, %v558_v15 }
 0x166   : > { %v561_v17 = vsel %vm559_vm10, %v558_v15, %v560_v16 }
 0x167   : > { %562 = vst [vmem:[%s224_s12] sm:$0xff] %v561_v17 }
 0x168   : > { %883 = shalt.err (!%p880_p9)
}
 0x169   : > { %708 = dma.vmem_to_hbm [thread:$0]  (%p1048_p3), %s579_s21, 128, %s581_s22, %s564_s15  }
 0x16a PF: > { %p725_p10 = scmp.ge.s32.totalorder %s960_s25, 2  ;;  %s592_s24 = sand.u32 1, %s932_s18  }
 0x16b   : > { %s593_s29 = scalar_lea.sflag [#allocation6], %s592_s24 }
 0x16c   : > { %p718_p11 = pnand %p725_p10, %p1057_p8 }
 0x16e   : > { %p719_p12 = pneg %p718_p11 }
 0x170   : > { %927 = dma.done.wait (%p719_p12), %s593_s29, 128  }
 0x171   : > { %929 = vsyncadd (%p719_p12), %s593_s29, 4294967168  ;;  %s20_s25 = sadd.s32 1, %s960_s25   ;;  %s1190_s22 = sld [smem:[#allocation15_spill]] }
 0x172   : > { %p17_p13 = scmp.ge.s32.totalorder %s20_s25, 6   ;;  %s1191_s7 = sld [smem:[#allocation16_spill]] }
 0x173   : > { %s1192_s24 = sld [smem:[#allocation17_spill]]  ;;  %s1193_s18 = smov %s936_s19 }
 0x174   : > { %s1194_s19 = smov %s940_s20  ;;  %s1195_s20 = smov %s1078_s16 }
 0x175   : > { %s1196_s21 = smov %s952_s23  ;;  %19 = sbr.rel (!%p17_p13) target bundleno = 7 (0x7), region = 114 }
 0x178   : > { %s1197_s23 = smov %s1191_s7 }
 0x17a   :  { %599 = vsyncpa [#allocation5], 1 }
 0x17b   :  { %601 = vsyncpa [#allocation5 + $0x1], 1 }
 0x17c   :  { %602 = vsyncpa [#allocation8], 1 }
 0x17d   :  { %603 = vsyncpa [#allocation6], 1 }
 0x17e   :  { %605 = vsyncpa [#allocation6 + $0x1], 1 }
 0x17f   :  { %606 = vsyncmov [#allocation3] }
 0x182   :  { %s607_s8 = vpop.sfrf %606 }
 0x183   :  { %p699_p3 = scmp.ne.s32.totalorder %s607_s8, 0 }
 0x185   :  { %611 = shalt.err (%p699_p3)  }

</bundles_post_ra>
